<compile_context>
chip_gen: v7x
topology: tpu7x:2x2x1
jax: 0.10.0
libtpu: 0.0.40
codegen_flags: <defaults>
</compile_context>

<pallas_src>
import functools

import jax
import jax.numpy as jnp
from jax.experimental import pallas as pl
from jax.experimental.pallas import tpu as pltpu


_SUBLANE = {4: 8, 2: 16, 1: 32}   # itemsize -> sublane packing


def _round_up(x, m):
    return ((x + m - 1) // m) * m


def _vmem_limit_bytes():
    """Generation-aware scoped-VMEM limit (~half of physical per-core VMEM)."""
    try:
        cap = int(pltpu.get_tpu_info().vmem_capacity_bytes)
    except Exception:
        cap = 64 * 1024 * 1024          # conservative fallback (v7x per-core)
    # 64 MiB on v5e/v6e (128 MiB physical), 32 MiB on v7x (64 MiB physical).
    return max(min(cap // 2, 64 * 1024 * 1024), 16 * 1024 * 1024)


def _fc_kernel(x_ref, w_ref, b_ref, out_ref, *, out_size):
    # x_ref:   (tm, K)        feats tile (input dtype; cast here, not in wrapper)
    # w_ref:   (K, o_pad)     weight, pre-transposed, output dim zero-padded
    # b_ref:   (1, out_size)  bias (f32)
    # out_ref: (tm, out_size) natural-width output
    x = x_ref[...].astype(w_ref.dtype)                       # no-op if already cdt
    acc = jnp.dot(x, w_ref[...], preferred_element_type=jnp.float32)
    out_ref[...] = (acc[:, :out_size] + b_ref[...]).astype(out_ref.dtype)


def prepare_fc_params(weight, bias, compute_dtype=jnp.bfloat16):
    """One-time parameter prep (hoist out of the per-forward path).

    weight: (out_size, in_size)  -- nn.Linear weight, PyTorch layout
    bias:   (out_size,)
    Returns (w_t, b_row):
      w_t:   (K, o_pad)  W^T cast to compute dtype, output dim padded to 128,
             K padded to 128 only when in_size is not lane-aligned.
      b_row: (1, out_size) f32 bias row.
    """
    out_size, in_size = weight.shape
    cdt = jnp.dtype(compute_dtype)
    k_dim = in_size if in_size % 128 == 0 else _round_up(in_size, 128)
    o_pad = _round_up(max(out_size, 1), 128)
    w_t = jnp.zeros((k_dim, o_pad), cdt).at[:in_size, :out_size].set(
        weight.T.astype(cdt))
    b_row = bias.astype(jnp.float32).reshape(1, out_size)
    return w_t, b_row


def fc_layer(feats, w_t, b_row, *, tm=1024):
    """dsmil FCLayer forward: returns (feats, feats @ W.T + b)."""
    N, in_size = feats.shape
    k_dim, o_pad = w_t.shape
    out_size = b_row.shape[1]
    cdt = jnp.dtype(w_t.dtype)
    out_dtype = feats.dtype

    if k_dim != in_size:
        # in_size not lane-aligned: single padded+cast copy (only case where
        # a wrapper-side feats copy is made).
        x_in = jnp.zeros((N, k_dim), cdt).at[:, :in_size].set(feats.astype(cdt))
    else:
        x_in = feats                     # no copy; cast happens in-kernel

    x_isz = jnp.dtype(x_in.dtype).itemsize
    o_isz = jnp.dtype(out_dtype).itemsize
    sub = max(_SUBLANE[x_isz], _SUBLANE[o_isz])

    # Row tile: large (amortize per-step overhead), but
    #   - no larger than the problem,
    #   - >= 2 grid steps when N allows (v7x megacore row sharding),
    #   - double-buffered feats/out tiles + resident weight fit the budget.
    tm_eff = max(sub, min(_round_up(tm, sub), _round_up(N, sub)))
    tm_eff = min(tm_eff, max(sub, _round_up((N + 1) // 2, sub)))

    vmem_limit = _vmem_limit_bytes()
    resident = (2 * _round_up(k_dim, 32) * o_pad * cdt.itemsize   # weight (2 bufs)
                + 2 * 8 * 128 * 4)                                # bias tile
    tile_budget = max(vmem_limit // 2 - resident, 1 << 20)
    bytes_per_row = 2 * (_round_up(k_dim, 128) * x_isz
                         + _round_up(out_size, 128) * o_isz)
    tm_cap = max(sub, (tile_budget // bytes_per_row) // sub * sub)
    tm_eff = min(tm_eff, tm_cap)

    grid = ((N + tm_eff - 1) // tm_eff,)

    cost = pl.CostEstimate(
        flops=2 * N * k_dim * o_pad,
        transcendentals=0,
        bytes_accessed=int(N * k_dim * x_isz
                           + k_dim * o_pad * cdt.itemsize
                           + out_size * 4
                           + N * out_size * o_isz),
    )

    kernel = functools.partial(_fc_kernel, out_size=out_size)

    out = pl.pallas_call(
        kernel,
        out_shape=jax.ShapeDtypeStruct((N, out_size), out_dtype),
        grid=grid,
        in_specs=[
            pl.BlockSpec((tm_eff, k_dim), lambda i: (i, 0)),
            pl.BlockSpec((k_dim, o_pad), lambda i: (0, 0)),   # grid-invariant
            pl.BlockSpec((1, out_size), lambda i: (0, 0)),    # grid-invariant
        ],
        out_specs=pl.BlockSpec((tm_eff, out_size), lambda i: (i, 0)),
        compiler_params=pltpu.CompilerParams(
            dimension_semantics=("parallel",),   # rows shard across v7x TCs
            vmem_limit_bytes=vmem_limit,
        ),
        cost_estimate=cost,
    )(x_in, w_t, b_row)

    # Module returns (feats, x).
    return feats, out


if __name__ == "__main__":
    key = jax.random.PRNGKey(0)
    k_feats, k_w, k_b = jax.random.split(key, 3)

    N, in_size, out_size = 16, 32, 1   # FCLayer(in_size, out_size=1)

    feats = jax.random.normal(k_feats, (N, in_size), dtype=jnp.float32)
    bound = 1.0 / jnp.sqrt(in_size)
    weight = jax.random.uniform(k_w, (out_size, in_size), jnp.float32, -bound, bound)
    bias = jax.random.uniform(k_b, (out_size,), jnp.float32, -bound, bound)

    # Reference (plain JAX, f32).
    x_ref = feats @ weight.T + bias

    # One-time parameter prep (hoisted out of the forward path), bf16 compute.
    w_bf16, b_row = prepare_fc_params(weight, bias, jnp.bfloat16)
    feats_out, x = fc_layer(feats, w_bf16, b_row)
    jax.block_until_ready((feats_out, x))
    assert feats_out.shape == (N, in_size) and x.shape == (N, out_size)
    assert jnp.array_equal(feats_out, feats)
    assert jnp.allclose(x, x_ref, atol=2e-2, rtol=2e-2)

    # f32-compute path: tight-tolerance check.
    w_f32, b_row32 = prepare_fc_params(weight, bias, jnp.float32)
    _, x_f32 = fc_layer(feats, w_f32, b_row32)
    jax.block_until_ready(x_f32)
    assert jnp.allclose(x_f32, x_ref, atol=1e-5, rtol=1e-5)

    # Ragged N (grid does not divide evenly) handled by Pallas edge blocks.
    feats_r = feats[:13]
    feats_out_r, x_r = fc_layer(feats_r, w_f32, b_row32)
    jax.block_until_ready(x_r)
    assert feats_out_r.shape == (13, in_size) and x_r.shape == (13, out_size)
    assert jnp.allclose(x_r, x_ref[:13], atol=1e-5, rtol=1e-5)

    # Lane-aligned in_size: no wrapper copy of feats at all.
    in2 = 128
    feats2 = jax.random.normal(k_feats, (40, in2), dtype=jnp.float32)
    weight2 = jax.random.uniform(k_w, (out_size, in2), jnp.float32, -bound, bound)
    w2, b2 = prepare_fc_params(weight2, bias, jnp.float32)
    _, x2 = fc_layer(feats2, w2, b2)
    jax.block_until_ready(x2)
    assert x2.shape == (40, out_size)
    assert jnp.allclose(x2, feats2 @ weight2.T + bias, atol=1e-5, rtol=1e-5)

    print("KERNEL_OK")
</pallas_src>

<mosaic_0001>
module attributes {stable_mosaic.version = 11 : i64} {
  func.func @_fc_kernel(%arg0: i32, %arg1: memref<16x128xbf16, #tpu.memory_space<vmem>>, %arg2: memref<128x128xbf16, #tpu.memory_space<vmem>>, %arg3: memref<1x1xf32, #tpu.memory_space<vmem>>, %arg4: memref<16x1xf32, #tpu.memory_space<vmem>>) attributes {dimension_semantics = [#tpu.dimension_semantics<parallel>], iteration_bounds = array<i64: 1>, scalar_prefetch = 0 : i64, scratch_operands = 0 : i64, tpu.core_type = #tpu.core_type<tc>, window_params = [{transform_indices = @transform_0, window_bounds = array<i64: 16, 128>}, {pipeline_mode = #tpu.pipeline_mode<synchronous>, transform_indices = @transform_1, window_bounds = array<i64: 128, 128>}, {pipeline_mode = #tpu.pipeline_mode<synchronous>, transform_indices = @transform_2, window_bounds = array<i64: 1, 1>}, {transform_indices = @transform_3, window_bounds = array<i64: 16, 1>}]} {
    %c0 = arith.constant 0 : index
    %c0_0 = arith.constant 0 : index
    %0 = vector.load %arg1[%c0, %c0_0] : memref<16x128xbf16, #tpu.memory_space<vmem>>, vector<16x128xbf16>
    %c0_1 = arith.constant 0 : index
    %c0_2 = arith.constant 0 : index
    %1 = vector.load %arg2[%c0_1, %c0_2] : memref<128x128xbf16, #tpu.memory_space<vmem>>, vector<128x128xbf16>
    %cst = arith.constant dense<0.000000e+00> : vector<16x128xf32>
    %2 = tpu.matmul %0, %1, %cst {dimension_numbers = #tpu.dot_dimension_numbers<[1], [0], [0], [1], [0, 0, 1, 1], [], []>} : vector<16x128xbf16>, vector<128x128xbf16>, vector<16x128xf32> -> vector<16x128xf32>
    %3 = vector.extract_strided_slice %2 {offsets = [0, 0], sizes = [16, 1], strides = [1, 1]} : vector<16x128xf32> to vector<16x1xf32>
    %c0_3 = arith.constant 0 : index
    %c0_4 = arith.constant 0 : index
    %4 = vector.load %arg3[%c0_3, %c0_4] : memref<1x1xf32, #tpu.memory_space<vmem>>, vector<1x1xf32>
    %5 = vector.broadcast %4 : vector<1x1xf32> to vector<16x1xf32>
    %6 = arith.addf %3, %5 : vector<16x1xf32>
    %c0_5 = arith.constant 0 : index
    %c0_6 = arith.constant 0 : index
    %7 = vector.load %arg4[%c0_5, %c0_6] : memref<16x1xf32, #tpu.memory_space<vmem>>, vector<16x1xf32>
    tpu.vector_store %arg4[%c0_5, %c0_6], %6 {strides = array<i32>} : memref<16x1xf32, #tpu.memory_space<vmem>>, vector<16x1xf32>,
    return
  }
  func.func @transform_0(%arg0: i32) -> (i32, i32) {
    %c0_i32 = arith.constant 0 : i32
    %c0_i32_0 = arith.constant 0 : i32
    return %arg0, %c0_i32 : i32, i32
  }
  func.func @transform_1(%arg0: i32) -> (i32, i32) {
    %c0_i32 = arith.constant 0 : i32
    %c0_i32_0 = arith.constant 0 : i32
    %c0_i32_1 = arith.constant 0 : i32
    return %c0_i32, %c0_i32_0 : i32, i32
  }
  func.func @transform_2(%arg0: i32) -> (i32, i32) {
    %c0_i32 = arith.constant 0 : i32
    %c0_i32_0 = arith.constant 0 : i32
    %c0_i32_1 = arith.constant 0 : i32
    return %c0_i32, %c0_i32_0 : i32, i32
  }
  func.func @transform_3(%arg0: i32) -> (i32, i32) {
    %c0_i32 = arith.constant 0 : i32
    %c0_i32_0 = arith.constant 0 : i32
    return %arg0, %c0_i32 : i32, i32
  }
}

</mosaic_0001>

<bundles_post_ra>
// kernel: tpu_custom_call.1
= control target key start
LH: loop header
LB: loop body
LE: loop exit
PB: predicated region body
PF: predicated region fallthrough
CT: control target
= control target key end

     0   :  { %s337_s0 = inlined_call_operand.hbm [shape: bf16[16,128], index: 0, kind: input, shape index: {}]   ;;  %s338_s1 = inlined_call_operand.hbm [shape: bf16[128,128], index: 1, kind: input, shape index: {}]   ;;  %s339_s2 = inlined_call_operand.<no memory space> [shape: f32[1,1], index: 2, kind: input, shape index: {}]   ;;  %s340_s3 = inlined_call_operand.vmem [shape: f32[16,1], index: 3, kind: output, shape index: {}]  }
   0x1   :  { %v8_v0 = vstv %s339_s2 }
   0x2   :  { %9 = vst [vmem:[#allocation2] sm:$0x1] %v8_v0 }
   0x3   :  { %10 = vsyncpa [#allocation4], 0 }
   0x4   :  { %11 = vsyncpa [#allocation6], 0  ;;  %s278_s14 = smov [#allocation3]   ;;  %s230_s18 = scalar_lea.hbm %s337_s0, 128 }
   0x5   :  { %s17_s15 = sshll.u32 %s278_s14, 4  ;;  %p231_p0 = scmp.ne.s32.totalorder %s337_s0, %s230_s18  ;;  %s18_s15 = int_to_ptr.vmem [resolvable:$true] %s17_s15 }
   0x6   :  { %p234_p1 = scmp.lt.u32.totalorder %s230_s18, %s337_s0 }
   0x8   :  { %p236_p2 = pnand %p234_p1, %p231_p0 }
   0xa   :  { %239 = shalt.err (!%p236_p2)
}
   0xb   :  { %s240_s2 = scalar_lea.vmem %s18_s15, 128  ;;  %p245_p4 = scmp.lt.s32.totalorder %s18_s15, %s18_s15 }
   0xc   :  { %p241_p3 = scmp.ne.s32.totalorder %s18_s15, %s240_s2  ;;  %p246_p5 = scmp.lt.s32.totalorder %s240_s2, %s240_s2 }
   0xe   :  { %p247_p6 = por %p246_p5, %p245_p4 }
  0x10   :  { %p248_p7 = pnand %p247_p6, %p241_p3 }
  0x12   :  { %251 = shalt.err (!%p248_p7)
}
  0x13   :  { %s279_s23 = smov 64   ;;  %s280_s24 = smov 4  }
  0x14   :  { %23 = dma.hbm_to_vmem [thread:$0]  %s337_s0, 128, %s18_s15, [#allocation4], %s279_s23, %s279_s23, %s280_s24  }
  0x15   :  { %s281_s27 = smov [#allocation5]   ;;  %s252_s4 = scalar_lea.hbm %s338_s1, 1024 }
  0x16   :  { %s29_s28 = sshll.u32 %s281_s27, 4  ;;  %p253_p8 = scmp.ne.s32.totalorder %s338_s1, %s252_s4  ;;  %s30_s28 = int_to_ptr.vmem [resolvable:$true] %s29_s28 }
  0x17   :  { %p256_p9 = scmp.lt.u32.totalorder %s252_s4, %s338_s1 }
  0x19   :  { %p258_p10 = pnand %p256_p9, %p253_p8 }
  0x1b   :  { %261 = shalt.err (!%p258_p10)
}
  0x1c   :  { %s262_s9 = scalar_lea.vmem %s30_s28, 1024  ;;  %p267_p12 = scmp.lt.s32.totalorder %s30_s28, %s30_s28 }
  0x1d   :  { %p263_p11 = scmp.ne.s32.totalorder %s30_s28, %s262_s9  ;;  %p268_p13 = scmp.lt.s32.totalorder %s262_s9, %s262_s9 }
  0x1f   :  { %p269_p0 = por %p268_p13, %p267_p12 }
  0x21   :  { %p270_p1 = pnand %p269_p0, %p263_p11 }
  0x23   :  { %273 = shalt.err (!%p270_p1)
}
  0x24   :  { %35 = dma.hbm_to_vmem [thread:$0]  %s338_s1, 1024, %s30_s28, [#allocation6], %s279_s23, %s279_s23, %s280_s24  }
  0x25   :  { %274 = dma.done.wait [#allocation4], 128  }
  0x26   :  { %275 = vsyncadd [#allocation4], 4294967168 }
  0x27   :  { %276 = dma.done.wait [#allocation6], 1024  }
  0x28   :  { %277 = vsyncadd [#allocation6], 4294966272  ;;  %v282_v1 = vmov 0.0   ;;  %vm283_vm0 = vmmov 0   ;;  %v221_v2 = vld [vmem:[#allocation5] sm:$0xff]   ;;  %v222_v3 = vld [vmem:[#allocation5 + $0x8] sm:$0xff]  }
  0x29   :  { %195 = vmatprep.subr.bf16.mxu0 %v282_v1  ;;  %211 = vmatprep.mubr.msk.bf16.mxu0 %vm283_vm0, %v282_v1  ;;  %v223_v4 = vld [vmem:[#allocation5 + $0x10] sm:$0xff]   ;;  %v224_v5 = vld [vmem:[#allocation5 + $0x18] sm:$0xff]   ;;  %v225_v6 = vld [vmem:[#allocation5 + $0x20] sm:$0xff]   ;;  %vm167_vm1 = vcmask 7168  }
  0x2a   :  { %196 = vmatpush3.bf16.msra.mxu0 %v221_v2  ;;  %v226_v7 = vld [vmem:[#allocation5 + $0x28] sm:$0xff]   ;;  %v227_v8 = vld [vmem:[#allocation5 + $0x30] sm:$0xff]   ;;  %v228_v9 = vld [vmem:[#allocation5 + $0x38] sm:$0xff]  }
  0x2b   :  { %197 = vmatprep.subr.bf16.mxu0 %v282_v1  ;;  %v229_v10 = vld [vmem:[#allocation3] sm:$0xff]   ;;  %v185_v11 = vld [vmem:[#allocation2] ss:$0 sm:$0xff] }
  0x2e   :  { %198 = vmatpush3.bf16.msra.mxu0 %v222_v3 }
  0x2f   :  { %199 = vmatprep.subr.bf16.mxu0 %v282_v1 }
  0x32   :  { %200 = vmatpush3.bf16.msra.mxu0 %v223_v4 }
  0x33   :  { %201 = vmatprep.subr.bf16.mxu0 %v282_v1 }
  0x36   :  { %202 = vmatpush3.bf16.msra.mxu0 %v224_v5 }
  0x37   :  { %203 = vmatprep.subr.bf16.mxu0 %v282_v1 }
  0x3a   :  { %204 = vmatpush3.bf16.msra.mxu0 %v225_v6 }
  0x3b   :  { %205 = vmatprep.subr.bf16.mxu0 %v282_v1 }
  0x3e   :  { %206 = vmatpush3.bf16.msra.mxu0 %v226_v7 }
  0x3f   :  { %207 = vmatprep.subr.bf16.mxu0 %v282_v1 }
  0x42   :  { %208 = vmatpush3.bf16.msra.mxu0 %v227_v8 }
  0x43   :  { %209 = vmatprep.subr.bf16.mxu0 %v282_v1 }
  0x46   :  { %210 = vmatpush3.bf16.msra.mxu0 %v228_v9 }
  0x49   :  { %212 = vmatmul.mubr.bf16.vlgmr.msra.gmra.mrb[0].mxu0 %v229_v10 }
 0x11c   :  { %v151_v12 = vpop.f32.mrb[0].mxu0 }
 0x11d   :  { %v165_v13 = vadd.f32 %v185_v11, %v151_v12  ;;  %v213_v14 = vpop.f32.mrb[1].mxu0 }
 0x11e   :  { %v154_v15 = vpop.f32.mrb[2].mxu0 }
 0x11f   :  { %168 = vst.msk [vmem:[%s340_s3] sm:$0xff] %vm167_vm1, %v165_v13  ;;  %v166_v16 = vadd.f32 %v185_v11, %v154_v15  ;;  %v214_v17 = vpop.f32.mrb[3].mxu0 }
 0x121   :  { %169 = vst.msk [vmem:[%s340_s3 + $0x8] sm:$0xff] %vm167_vm1, %v166_v16 }
 0x122   :  { %174 = vsyncpa [#allocation4], 1 }
 0x123   :  { %175 = vsyncpa [#allocation6], 1 }

</bundles_post_ra>
